<compile_context>
chip_gen: v7x
topology: tpu7x:2x2x1
jax: 0.10.0
libtpu: 0.0.40
codegen_flags: <defaults>
</compile_context>

<pallas_src>
import functools

import jax
import jax.numpy as jnp
from jax.experimental import pallas as pl
from jax.experimental.pallas import tpu as pltpu

FIXED_MARGIN = 0.5
LAMBDA_WEIGHT = 0.6
EPS = 1e-8  # matches torch.nn.functional.cosine_similarity default eps


# --------------------------------------------------------------------------- #
# Kernel A: row-wise L2 normalization + global adaptive margin.
#   sum_ij sim_ij == || sum_i xn_i ||^2, so only an O(N*D) pass is needed.
# --------------------------------------------------------------------------- #
def _normalize_margin_kernel(feat_ref, xn_ref, margin_ref, svec_ref, *,
                             n_total: float):
    i = pl.program_id(0)

    @pl.when(i == 0)
    def _init():
        svec_ref[...] = jnp.zeros_like(svec_ref)

    x = feat_ref[...]                                          # (TN, D) f32
    sq = jnp.sum(x * x, axis=-1, keepdims=True)                # (TN, 1)
    # rsqrt -> EUP slot; clamping ||x||^2 at EPS^2 == clamping ||x|| at EPS.
    # Padded all-zero rows normalize to exact zeros (0 * 1/EPS == 0).
    xn = x * jax.lax.rsqrt(jnp.maximum(sq, EPS * EPS))          # (TN, D) f32
    xn_ref[...] = xn.astype(xn_ref.dtype)
    svec_ref[...] += jnp.sum(xn, axis=0, keepdims=True)         # (1, D) f32

    @pl.when(i == pl.num_programs(0) - 1)
    def _finalize():
        s = svec_ref[...]
        sim_sum = jnp.sum(s * s, keepdims=True)                 # (1, 1)
        adaptive = sim_sum / (n_total * n_total)
        margin_ref[...] = (LAMBDA_WEIGHT * FIXED_MARGIN
                           + (1.0 - LAMBDA_WEIGHT) * adaptive)


# --------------------------------------------------------------------------- #
# Kernel B: single pass over the (row-tile, col-tile) grid.
# --------------------------------------------------------------------------- #
def _pair_loss_kernel(xr_ref, xc_ref, lab_col_ref, lab_row_ref, margin_ref,
                      out_ref, acc_pos_ref, acc_pnum_ref, acc_hinge_ref, *,
                      n_total: float, n_valid: int, tn: int, needs_mask: bool):
    i = pl.program_id(0)
    j = pl.program_id(1)
    last_i = pl.num_programs(0) - 1
    last_j = pl.num_programs(1) - 1

    @pl.when((i == 0) & (j == 0))
    def _init():
        acc_pos_ref[...] = jnp.zeros_like(acc_pos_ref)
        acc_pnum_ref[...] = jnp.zeros_like(acc_pnum_ref)
        acc_hinge_ref[...] = jnp.zeros_like(acc_hinge_ref)

    # Transpose-free "NT" matmul: contract D on BOTH operands so the MXU
    # consumes the column tile as-is (no XLU transpose), f32 accumulation.
    sim = jax.lax.dot_general(
        xr_ref[...], xc_ref[...],
        dimension_numbers=(((1,), (1,)), ((), ())),
        preferred_element_type=jnp.float32)                     # (TN, TN) f32

    same = lab_col_ref[...] == lab_row_ref[...]                 # (TN, TN) bool
    if needs_mask:
        # Mask out padded rows/cols (N was padded up to a multiple of 128).
        row_id = jax.lax.broadcasted_iota(jnp.int32, (tn, 1), 0) + i * tn
        col_id = jax.lax.broadcasted_iota(jnp.int32, (1, tn), 1) + j * tn
        valid = (row_id < n_valid) & (col_id < n_valid)
        pos = jnp.where(same & valid, 1.0, 0.0)
        neg = jnp.where((~same) & valid, 1.0, 0.0)
    else:
        pos = same.astype(jnp.float32)
        neg = 1.0 - pos

    margin = margin_ref[...]                                    # (1, 1), broadcasts
    acc_pos_ref[...] += jnp.sum(pos)
    acc_pnum_ref[...] += jnp.sum((1.0 - sim) * pos)
    acc_hinge_ref[...] += jnp.sum(jnp.maximum(sim - margin, 0.0) * neg)

    @pl.when((i == last_i) & (j == last_j))
    def _finalize():
        n2 = n_total * n_total
        sum_pos = acc_pos_ref[...]               # > 0 (diagonal pairs are positive)
        pos_loss = acc_pnum_ref[...] / sum_pos
        # Negative count = n^2 - sum(pos): no second NxN reduction needed.
        neg_cnt = n2 - sum_pos
        # Guard the "all labels identical" batch (PyTorch would return NaN).
        neg_loss = jnp.where(neg_cnt > 0.5,
                             acc_hinge_ref[...] / jnp.maximum(neg_cnt, 1.0),
                             0.0)
        out_ref[...] = pos_loss + neg_loss


def _pick_tile(n_pad: int, d: int) -> int:
    """Largest MXU-friendly tile dividing n_pad that fits the VMEM budget.

    Budgeted against v7x (64 MiB physical / 32 MiB scoped): double-buffered
    row + col feature tiles plus ~6 (TN, TN) f32 temporaries stay under 24 MiB.
    """
    budget = 24 * 1024 * 1024
    for tn in (512, 256, 128):
        if n_pad % tn == 0:
            feat_bytes = 2 * 2 * tn * d * 4     # row + col tiles, double-buffered
            tmp_bytes = 6 * tn * tn * 4         # sim / masks / hinge temporaries
            if feat_bytes + tmp_bytes <= budget:
                return tn
    return 128


def contrastive_loss(features: jax.Array, labels: jax.Array,
                     *, use_bf16_matmul: bool = True) -> jax.Array:
    """features: (N, D) float, labels: (N,) int -> scalar float32 loss."""
    n, d = features.shape
    features = features.astype(jnp.float32)
    labels = labels.astype(jnp.int32)

    # Pad N to a multiple of 128; padded pairs are masked out inside kernel B.
    n_pad = ((n + 127) // 128) * 128
    if n_pad != n:
        features = jnp.pad(features, ((0, n_pad - n), (0, 0)))
        labels = jnp.pad(labels, (0, n_pad - n), constant_values=-1)

    tn = _pick_tile(n_pad, d)
    tiles = n_pad // tn
    feat_dtype = jnp.bfloat16 if use_bf16_matmul else jnp.float32
    feat_bytes = 2 if use_bf16_matmul else 4

    # ---- pass 1: normalize rows once + global adaptive margin --------------- #
    norm_kernel = functools.partial(_normalize_margin_kernel, n_total=float(n))
    xn, margin = pl.pallas_call(
        norm_kernel,
        out_shape=(jax.ShapeDtypeStruct((n_pad, d), feat_dtype),
                   jax.ShapeDtypeStruct((1, 1), jnp.float32)),
        grid_spec=pltpu.PrefetchScalarGridSpec(
            num_scalar_prefetch=0,
            grid=(tiles,),
            in_specs=[pl.BlockSpec((tn, d), lambda i: (i, 0))],
            out_specs=(pl.BlockSpec((tn, d), lambda i: (i, 0)),
                       pl.BlockSpec((1, 1), lambda i: (0, 0))),
            scratch_shapes=[pltpu.VMEM((1, d), jnp.float32)]),
        compiler_params=pltpu.CompilerParams(
            dimension_semantics=("arbitrary",),
            vmem_limit_bytes=32 * 1024 * 1024),
        cost_estimate=pl.CostEstimate(
            flops=int(4 * n_pad * d),
            transcendentals=int(n_pad),
            bytes_accessed=int(n_pad * d * (4 + feat_bytes) + 4)),
    )(features)

    # ---- pass 2: single tiled pass over the NxN pairwise loss --------------- #
    lab_col = labels.reshape(n_pad, 1)     # broadcast-compare inside the kernel
    lab_row = labels.reshape(1, n_pad)

    pair_kernel = functools.partial(
        _pair_loss_kernel,
        n_total=float(n), n_valid=n, tn=tn, needs_mask=(n_pad != n))

    cost = pl.CostEstimate(
        flops=int(2 * n_pad * n_pad * d),   # one pass over the NxN sim matrix
        transcendentals=0,
        bytes_accessed=int(2 * tiles * n_pad * d * feat_bytes
                           + 2 * tiles * n_pad * 4 + 4))

    out = pl.pallas_call(
        pair_kernel,
        out_shape=jax.ShapeDtypeStruct((1, 1), jnp.float32),
        grid_spec=pltpu.PrefetchScalarGridSpec(
            num_scalar_prefetch=0,
            grid=(tiles, tiles),            # row tile outer, col tile inner
            in_specs=[
                pl.BlockSpec((tn, d), lambda i, j: (i, 0)),   # row feature tile
                pl.BlockSpec((tn, d), lambda i, j: (j, 0)),   # col feature tile
                pl.BlockSpec((tn, 1), lambda i, j: (i, 0)),   # row labels (column)
                pl.BlockSpec((1, tn), lambda i, j: (0, j)),   # col labels (row)
                pl.BlockSpec((1, 1), lambda i, j: (0, 0)),    # mixed margin
            ],
            out_specs=pl.BlockSpec((1, 1), lambda i, j: (0, 0)),
            scratch_shapes=[pltpu.VMEM((1, 1), jnp.float32) for _ in range(3)]),
        compiler_params=pltpu.CompilerParams(
            # Shared scalar accumulators + single output block -> serial grid.
            dimension_semantics=("arbitrary", "arbitrary"),
            vmem_limit_bytes=32 * 1024 * 1024),
        cost_estimate=cost,
    )(xn, xn, lab_col, lab_row, margin)
    return out[0, 0]


def contrastive_loss_ref(features, labels, *, bf16_sim: bool = False):
    """Pure-JAX mirror of the PyTorch module.

    bf16_sim=True emulates the kernel's MXU precision (bf16 similarity inputs,
    f32 accumulation; margin stays f32) for a tight algorithmic comparison.
    """
    n = features.shape[0]
    f = features.astype(jnp.float32)
    norms = jnp.maximum(jnp.linalg.norm(f, axis=-1, keepdims=True), EPS)
    xn = f / norms
    sim_f32 = jax.lax.dot_general(xn, xn, (((1,), (1,)), ((), ())),
                                  preferred_element_type=jnp.float32)
    if bf16_sim:
        xb = xn.astype(jnp.bfloat16)
        sim = jax.lax.dot_general(xb, xb, (((1,), (1,)), ((), ())),
                                  preferred_element_type=jnp.float32)
    else:
        sim = sim_f32
    pos = (labels[:, None] == labels[None, :]).astype(jnp.float32)
    neg = 1.0 - pos
    adaptive = sim_f32.sum() / (n * n)
    mixed = LAMBDA_WEIGHT * FIXED_MARGIN + (1.0 - LAMBDA_WEIGHT) * adaptive
    pos_loss = ((1.0 - sim) * pos).sum() / pos.sum()
    neg_loss = (jnp.maximum(sim - mixed, 0.0) * neg).sum() / neg.sum()
    return pos_loss + neg_loss


if __name__ == "__main__":
    key = jax.random.PRNGKey(0)

    # (N, D, num_classes): single aligned tile, a padded/masked case (N=200),
    # and a case that exercises the 3x3 tile grid.
    cases = [(8, 32, 3), (200, 32, 4), (384, 64, 5)]
    for case_idx, (n, d, ncls) in enumerate(cases):
        feats = jax.random.normal(jax.random.fold_in(key, case_idx), (n, d),
                                  dtype=jnp.float32)
        labels = (jnp.arange(n) % ncls).astype(jnp.int32)

        ref_f32 = contrastive_loss_ref(feats, labels)
        ref_mxu = contrastive_loss_ref(feats, labels, bf16_sim=True)

        # Default (performance) path: bf16 MXU inputs, f32 accumulation.
        out = contrastive_loss(feats, labels)
        jax.block_until_ready(out)
        assert jnp.allclose(out, ref_mxu, rtol=2e-4, atol=2e-4), (
            case_idx, float(out), float(ref_mxu))
        assert jnp.allclose(out, ref_f32, rtol=2e-2, atol=2e-2), (
            case_idx, float(out), float(ref_f32))

        # All-f32 path (looser tolerance only because the XLA reference matmul
        # may run at a different default TPU matmul precision than the MXU op).
        out_f32 = contrastive_loss(feats, labels, use_bf16_matmul=False)
        jax.block_until_ready(out_f32)
        assert jnp.allclose(out_f32, ref_f32, rtol=1e-2, atol=1e-2), (
            case_idx, float(out_f32), float(ref_f32))

    print("KERNEL_OK")
</pallas_src>

<mosaic_0001>
module attributes {stable_mosaic.version = 11 : i64} {
  func.func @_normalize_margin_kernel(%arg0: i32, %arg1: memref<128x32xf32, #tpu.memory_space<vmem>>, %arg2: memref<128x32xbf16, #tpu.memory_space<vmem>>, %arg3: memref<1x1xf32, #tpu.memory_space<vmem>>, %arg4: memref<1x32xf32, #tpu.memory_space<vmem>>) attributes {dimension_semantics = [#tpu.dimension_semantics<arbitrary>], iteration_bounds = array<i64: 1>, scalar_prefetch = 0 : i64, scratch_operands = 1 : i64, tpu.core_type = #tpu.core_type<tc>, window_params = [{transform_indices = @transform_0, window_bounds = array<i64: 128, 32>}, {transform_indices = @transform_1, window_bounds = array<i64: 128, 32>}, {pipeline_mode = #tpu.pipeline_mode<synchronous>, transform_indices = @transform_2, window_bounds = array<i64: 1, 1>}]} {
    %c0_i32 = arith.constant 0 : i32
    %0 = arith.cmpi eq, %arg0, %c0_i32 : i32
    %1 = arith.extui %0 : i1 to i32
    %c0_i32_0 = arith.constant 0 : i32
    %2 = arith.cmpi ne, %1, %c0_i32_0 : i32
    scf.if %2 {
      %cst_12 = arith.constant 0.000000e+00 : f32
      %22 = vector.broadcast %cst_12 : f32 to vector<1x32xf32>
      %c0_13 = arith.constant 0 : index
      %c0_14 = arith.constant 0 : index
      %23 = vector.load %arg4[%c0_13, %c0_14] : memref<1x32xf32, #tpu.memory_space<vmem>>, vector<1x32xf32>
      tpu.vector_store %arg4[%c0_13, %c0_14], %22 {strides = array<i32>} : memref<1x32xf32, #tpu.memory_space<vmem>>, vector<1x32xf32>,
    } else {
    }
    %c0 = arith.constant 0 : index
    %c0_1 = arith.constant 0 : index
    %3 = vector.load %arg1[%c0, %c0_1] : memref<128x32xf32, #tpu.memory_space<vmem>>, vector<128x32xf32>
    %4 = arith.mulf %3, %3 : vector<128x32xf32>
    %cst = arith.constant dense<0.000000e+00> : vector<128xf32>
    %5 = vector.multi_reduction <add>, %4, %cst [1] : vector<128x32xf32> to vector<128xf32>
    %6 = vector.shape_cast %5 : vector<128xf32> to vector<128x1xf32>
    %cst_2 = arith.constant 1.000000e-16 : f32
    %7 = vector.broadcast %cst_2 : f32 to vector<128x1xf32>
    %8 = arith.maximumf %6, %7 : vector<128x1xf32>
    %9 = math.rsqrt %8 : vector<128x1xf32>
    %10 = vector.broadcast %9 : vector<128x1xf32> to vector<128x32xf32>
    %11 = arith.mulf %3, %10 : vector<128x32xf32>
    %12 = arith.truncf %11 : vector<128x32xf32> to vector<128x32xbf16>
    %c0_3 = arith.constant 0 : index
    %c0_4 = arith.constant 0 : index
    %13 = vector.load %arg2[%c0_3, %c0_4] : memref<128x32xbf16, #tpu.memory_space<vmem>>, vector<128x32xbf16>
    tpu.vector_store %arg2[%c0_3, %c0_4], %12 {strides = array<i32>} : memref<128x32xbf16, #tpu.memory_space<vmem>>, vector<128x32xbf16>,
    %c0_5 = arith.constant 0 : index
    %c0_6 = arith.constant 0 : index
    %14 = vector.load %arg4[%c0_5, %c0_6] : memref<1x32xf32, #tpu.memory_space<vmem>>, vector<1x32xf32>
    %cst_7 = arith.constant dense<0.000000e+00> : vector<32xf32>
    %15 = vector.multi_reduction <add>, %11, %cst_7 [0] : vector<128x32xf32> to vector<32xf32>
    %16 = vector.shape_cast %15 : vector<32xf32> to vector<1x32xf32>
    %17 = arith.addf %14, %16 : vector<1x32xf32>
    %c0_8 = arith.constant 0 : index
    %c0_9 = arith.constant 0 : index
    %18 = vector.load %arg4[%c0_8, %c0_9] : memref<1x32xf32, #tpu.memory_space<vmem>>, vector<1x32xf32>
    tpu.vector_store %arg4[%c0_8, %c0_9], %17 {strides = array<i32>} : memref<1x32xf32, #tpu.memory_space<vmem>>, vector<1x32xf32>,
    %c0_i32_10 = arith.constant 0 : i32
    %19 = arith.cmpi eq, %arg0, %c0_i32_10 : i32
    %20 = arith.extui %19 : i1 to i32
    %c0_i32_11 = arith.constant 0 : i32
    %21 = arith.cmpi ne, %20, %c0_i32_11 : i32
    scf.if %21 {
      %c0_12 = arith.constant 0 : index
      %c0_13 = arith.constant 0 : index
      %22 = vector.load %arg4[%c0_12, %c0_13] : memref<1x32xf32, #tpu.memory_space<vmem>>, vector<1x32xf32>
      %23 = arith.mulf %22, %22 : vector<1x32xf32>
      %24 = vector.shape_cast %23 : vector<1x32xf32> to vector<1x1x32xf32>
      %cst_14 = arith.constant dense<0.000000e+00> : vector<1xf32>
      %25 = vector.multi_reduction <add>, %24, %cst_14 [1, 2] : vector<1x1x32xf32> to vector<1xf32>
      %26 = vector.shape_cast %25 : vector<1xf32> to vector<1x1x1xf32>
      %27 = vector.extract %26[0, 0, 0] : f32 from vector<1x1x1xf32>
      %28 = vector.broadcast %27 : f32 to vector<1x1xf32>
      %cst_15 = arith.constant 6.400000e+01 : f32
      %29 = vector.broadcast %cst_15 : f32 to vector<1x1xf32>
      %30 = arith.divf %28, %29 : vector<1x1xf32>
      %cst_16 = arith.constant 4.000000e-01 : f32
      %31 = vector.broadcast %cst_16 : f32 to vector<1x1xf32>
      %32 = arith.mulf %31, %30 : vector<1x1xf32>
      %cst_17 = arith.constant 3.000000e-01 : f32
      %33 = vector.broadcast %cst_17 : f32 to vector<1x1xf32>
      %34 = arith.addf %33, %32 : vector<1x1xf32>
      %c0_18 = arith.constant 0 : index
      %c0_19 = arith.constant 0 : index
      %35 = vector.load %arg3[%c0_18, %c0_19] : memref<1x1xf32, #tpu.memory_space<vmem>>, vector<1x1xf32>
      tpu.vector_store %arg3[%c0_18, %c0_19], %34 {strides = array<i32>} : memref<1x1xf32, #tpu.memory_space<vmem>>, vector<1x1xf32>,
    } else {
    }
    return
  }
  func.func @transform_0(%arg0: i32) -> (i32, i32) {
    %c0_i32 = arith.constant 0 : i32
    %c0_i32_0 = arith.constant 0 : i32
    return %arg0, %c0_i32 : i32, i32
  }
  func.func @transform_1(%arg0: i32) -> (i32, i32) {
    %c0_i32 = arith.constant 0 : i32
    %c0_i32_0 = arith.constant 0 : i32
    return %arg0, %c0_i32 : i32, i32
  }
  func.func @transform_2(%arg0: i32) -> (i32, i32) {
    %c0_i32 = arith.constant 0 : i32
    %c0_i32_0 = arith.constant 0 : i32
    %c0_i32_1 = arith.constant 0 : i32
    return %c0_i32, %c0_i32_0 : i32, i32
  }
}

</mosaic_0001>

<bundles_post_ra>
// kernel: tpu_custom_call.1
= control target key start
LH: loop header
LB: loop body
LE: loop exit
PB: predicated region body
PF: predicated region fallthrough
CT: control target
= control target key end

     0   :  { %vm49_vm0 = vcmask 261120   ;;  %s656_s0 = inlined_call_operand.vmem [shape: f32[128,32], index: 0, kind: input, shape index: {}]   ;;  %s657_s1 = inlined_call_operand.vmem [shape: bf16[128,32], index: 1, kind: output, shape index: {0}]   ;;  %s658_s2 = inlined_call_operand.hbm [shape: f32[1,1], index: 2, kind: output, shape index: {1}]  }
   0x1   :  { %v420_v0 = vld [vmem:[%s656_s0] sm:$0xff]  ;;  %v425_v1 = vld [vmem:[%s656_s0 + $0x10] sm:$0xff]  ;;  %v430_v2 = vld [vmem:[%s656_s0 + $0x8] sm:$0xff] }
   0x2   :  { %v33_v3 = vmul.f32 %v420_v0, %v420_v0  ;;  %v35_v4 = vmul.f32 %v425_v1, %v425_v1  ;;  %v34_v5 = vmul.f32 %v430_v2, %v430_v2  ;;  %v441_v6 = vld [vmem:[%s656_s0 + $0x18] sm:$0xff]  ;;  %v448_v8 = vld [vmem:[%s656_s0 + $0x20] sm:$0xff]  ;;  %v453_v9 = vld [vmem:[%s656_s0 + $0x28] sm:$0xff] }
   0x3   :  { %v36_v7 = vmul.f32 %v441_v6, %v441_v6  ;;  %v37_v14 = vmul.f32 %v448_v8, %v448_v8  ;;  %v38_v15 = vmul.f32 %v453_v9, %v453_v9 }
   0x4   :  { %v50_v10 = vsel %vm49_vm0, %v33_v3, 0.0  ;;  %v56_v11 = vsel %vm49_vm0, %v35_v4, 0.0  ;;  %v53_v12 = vsel %vm49_vm0, %v34_v5, 0.0 }
   0x5   :  { %51 = vadd.xlane.f32.xlu0 %v50_v10  ;;  %57 = vadd.xlane.f32.xlu1 %v56_v11  ;;  %v59_v13 = vsel %vm49_vm0, %v36_v7, 0.0 }
   0x6   :  { %8 = vsyncpa [#allocation4], 0  ;;  %v466_v16 = vld [vmem:[%s656_s0 + $0x30] sm:$0xff]  ;;  %v471_v17 = vld [vmem:[%s656_s0 + $0x38] sm:$0xff]  ;;  %v62_v18 = vsel %vm49_vm0, %v37_v14, 0.0  ;;  %v65_v19 = vsel %vm49_vm0, %v38_v15, 0.0 }
   0x7   :  { %v39_v20 = vmul.f32 %v466_v16, %v466_v16  ;;  %v40_v21 = vmul.f32 %v471_v17, %v471_v17  ;;  %v482_v22 = vld [vmem:[%s656_s0 + $0x40] sm:$0xff]  ;;  %v487_v23 = vld [vmem:[%s656_s0 + $0x48] sm:$0xff]  ;;  %v498_v28 = vld [vmem:[%s656_s0 + $0x50] sm:$0xff]  ;;  %vm15_vm1 = vcmask 253952   ;;  %v400_v48 = vmov 0.0   ;;  %s401_s15 = smov [#allocation3]  }
   0x8   :  { %v41_v26 = vmul.f32 %v482_v22, %v482_v22  ;;  %v42_v27 = vmul.f32 %v487_v23, %v487_v23  ;;  %v503_v29 = vld [vmem:[%s656_s0 + $0x58] sm:$0xff]  ;;  %v43_v32 = vmul.f32 %v498_v28, %v498_v28  ;;  %v514_v34 = vld [vmem:[%s656_s0 + $0x60] sm:$0xff]  ;;  %v519_v35 = vld [vmem:[%s656_s0 + $0x68] sm:$0xff]  ;;  %16 = vst.msk [vmem:[#allocation2] sm:$0x1] %vm15_vm1, %v400_v48  ;;  %vm210_vm2 = vcmask 257024  }
   0x9   :  { %54 = vadd.xlane.f32.xlu0 %v53_v12  ;;  %60 = vadd.xlane.f32.xlu1 %v59_v13  ;;  %v68_v24 = vsel %vm49_vm0, %v39_v20, 0.0  ;;  %v71_v25 = vsel %vm49_vm0, %v40_v21, 0.0  ;;  %v44_v33 = vmul.f32 %v503_v29, %v503_v29  ;;  %v45_v38 = vmul.f32 %v514_v34, %v514_v34  ;;  %v530_v40 = vld [vmem:[%s656_s0 + $0x70] sm:$0xff]  ;;  %v535_v41 = vld [vmem:[%s656_s0 + $0x78] sm:$0xff]  ;;  %s298_s16 = sshll.u32 %s401_s15, 4  ;;  %s299_s16 = int_to_ptr.vmem [resolvable:$true] %s298_s16 }
   0xa   :  { %v74_v30 = vsel %vm49_vm0, %v41_v26, 0.0  ;;  %v77_v31 = vsel %vm49_vm0, %v42_v27, 0.0  ;;  %v80_v36 = vsel %vm49_vm0, %v43_v32, 0.0  ;;  %v46_v39 = vmul.f32 %v519_v35, %v519_v35  ;;  %s376_s17 = scalar_lea.vmem %s299_s16, 16  ;;  %s380_s18 = scalar_lea.vmem %s299_s16, 32 }
   0xb   :  { %v83_v37 = vsel %vm49_vm0, %v44_v33, 0.0  ;;  %v86_v42 = vsel %vm49_vm0, %v45_v38, 0.0  ;;  %v47_v44 = vmul.f32 %v530_v40, %v530_v40  ;;  %v48_v45 = vmul.f32 %v535_v41, %v535_v41  ;;  %p377_p0 = scmp.ne.s32.totalorder %s299_s16, %s376_s17  ;;  %p381_p1 = scmp.lt.s32.totalorder %s299_s16, %s299_s16 }
   0xc   :  { %v89_v43 = vsel %vm49_vm0, %v46_v39, 0.0  ;;  %vm288_vm3 = vcmask 0   ;;  %p382_p2 = scmp.lt.s32.totalorder %s380_s18, %s376_s17 }
   0xd   :  { %63 = vadd.xlane.f32.xlu0 %v62_v18  ;;  %66 = vadd.xlane.f32.xlu1 %v65_v19  ;;  %v92_v46 = vsel %vm49_vm0, %v47_v44, 0.0  ;;  %v95_v47 = vsel %vm49_vm0, %v48_v45, 0.0 }
   0xe   :  { %p383_p3 = por %p382_p2, %p381_p1 }
  0x10   :  { %p384_p4 = pnand %p383_p3, %p377_p0 }
  0x11   :  { %69 = vadd.xlane.f32.xlu0 %v68_v24  ;;  %72 = vadd.xlane.f32.xlu1 %v71_v25 }
  0x15   :  { %75 = vadd.xlane.f32.xlu0 %v74_v30  ;;  %78 = vadd.xlane.f32.xlu1 %v77_v31 }
  0x19   :  { %81 = vadd.xlane.f32.xlu0 %v80_v36  ;;  %84 = vadd.xlane.f32.xlu1 %v83_v37 }
  0x1d   :  { %87 = vadd.xlane.f32.xlu0 %v86_v42  ;;  %90 = vadd.xlane.f32.xlu1 %v89_v43 }
  0x21   :  { %93 = vadd.xlane.f32.xlu0 %v92_v46  ;;  %96 = vadd.xlane.f32.xlu1 %v95_v47 }
  0x92   :  { %v52_v49 = vpop.xlane.xlu0 %51  ;;  %v58_v50 = vpop.xlane.xlu1 %57 }
  0x93   :  { %v98_v51 = vmax.f32 %v52_v49, 1e-16  ;;  %v100_v52 = vmax.f32 %v58_v50, 1e-16 }
  0x95   :  { %344 = vrsqrt.f32 %v98_v51 }
  0x96   :  { %346 = vrsqrt.f32 %v100_v52  ;;  %v55_v53 = vpop.xlane.xlu0 %54  ;;  %v61_v54 = vpop.xlane.xlu1 %60 }
  0x97   :  { %v99_v55 = vmax.f32 %v55_v53, 1e-16  ;;  %v101_v56 = vmax.f32 %v61_v54, 1e-16 }
  0x99   :  { %348 = vrsqrt.f32 %v99_v55 }
  0x9a   :  { %350 = vrsqrt.f32 %v101_v56  ;;  %v64_v57 = vpop.xlane.xlu0 %63  ;;  %v67_v58 = vpop.xlane.xlu1 %66 }
  0x9b   :  { %v102_v59 = vmax.f32 %v64_v57, 1e-16  ;;  %v103_v60 = vmax.f32 %v67_v58, 1e-16 }
  0x9d   :  { %352 = vrsqrt.f32 %v102_v59 }
  0x9e   :  { %354 = vrsqrt.f32 %v103_v60  ;;  %v70_v61 = vpop.xlane.xlu0 %69  ;;  %v73_v62 = vpop.xlane.xlu1 %72 }
  0x9f   :  { %v345_v63 = vpop.eup %344  ;;  %v104_v3 = vmax.f32 %v70_v61, 1e-16  ;;  %v105_v4 = vmax.f32 %v73_v62, 1e-16 }
  0xa0   :  { %v347_v5 = vpop.eup %346  ;;  %v130_v7 = vmul.f32 %v345_v63, %v420_v0 }
  0xa1   :  { %v132_v10 = vmul.f32 %v347_v5, %v425_v1  ;;  %356 = vrsqrt.f32 %v104_v3 }
  0xa2   :  { %v324_v11 = vpack.c.bf16 %v130_v7, %v130_v7  ;;  %358 = vrsqrt.f32 %v105_v4  ;;  %v76_v12 = vpop.xlane.xlu0 %75  ;;  %v79_v13 = vpop.xlane.xlu1 %78  ;;  %v228_v21 = vsel %vm49_vm0, %v130_v7, 0.0 }
  0xa3   :  { %v349_v14 = vpop.eup %348  ;;  %v326_v15 = vpack.c.bf16 %v132_v10, %v132_v10  ;;  %v106_v18 = vmax.f32 %v76_v12, 1e-16  ;;  %v107_v19 = vmax.f32 %v79_v13, 1e-16  ;;  %v231_v36 = vsel %vm49_vm0, %v132_v10, 0.0 }
  0xa4   :  { %v351_v20 = vpop.eup %350  ;;  %211 = vst.msk [vmem:[%s657_s1] sm:$0xf] %vm210_vm2, %v324_v11  ;;  %v131_v0 = vmul.f32 %v349_v14, %v430_v2 }
  0xa5   :  { %213 = vst.msk [vmem:[%s657_s1 + $0x8] sm:$0xf] %vm210_vm2, %v326_v15  ;;  %v133_v1 = vmul.f32 %v351_v20, %v441_v6  ;;  %360 = vrsqrt.f32 %v106_v18 }
  0xa6   :  { %v325_v24 = vpack.c.bf16 %v131_v0, %v131_v0  ;;  %v229_v25 = vsel %vm49_vm0, %v131_v0, 0.0  ;;  %362 = vrsqrt.f32 %v107_v19  ;;  %v82_v26 = vpop.xlane.xlu0 %81  ;;  %v85_v27 = vpop.xlane.xlu1 %84 }
  0xa7   :  { %v353_v30 = vpop.eup %352  ;;  %v230_v31 = vadd.f32 %v229_v25, %v228_v21  ;;  %v327_v32 = vpack.c.bf16 %v133_v1, %v133_v1  ;;  %v108_v2 = vmax.f32 %v82_v26, 1e-16  ;;  %v233_v6 = vsel %vm49_vm0, %v133_v1, 0.0 }
  0xa8   :  { %v355_v33 = vpop.eup %354  ;;  %212 = vst.msk [vmem:[%s657_s1 + $0x4] sm:$0xf] %vm210_vm2, %v325_v24  ;;  %v134_v37 = vmul.f32 %v353_v30, %v448_v8  ;;  %v109_v38 = vmax.f32 %v85_v27, 1e-16 }
  0xa9   :  { %214 = vst.msk [vmem:[%s657_s1 + $0xc] sm:$0xf] %vm210_vm2, %v327_v32  ;;  %v232_v39 = vadd.f32 %v231_v36, %v230_v31  ;;  %v135_v42 = vmul.f32 %v355_v33, %v453_v9  ;;  %364 = vrsqrt.f32 %v108_v2 }
  0xaa   :  { %v328_v43 = vpack.c.bf16 %v134_v37, %v134_v37  ;;  %v235_v44 = vsel %vm49_vm0, %v134_v37, 0.0  ;;  %366 = vrsqrt.f32 %v109_v38  ;;  %v88_v45 = vpop.xlane.xlu0 %87  ;;  %v91_v46 = vpop.xlane.xlu1 %90 }
  0xab   :  { %v357_v47 = vpop.eup %356  ;;  %v234_v48 = vadd.f32 %v233_v6, %v232_v39  ;;  %v329_v49 = vpack.c.bf16 %v135_v42, %v135_v42  ;;  %v110_v8 = vmax.f32 %v88_v45, 1e-16  ;;  %v237_v51 = vsel %vm49_vm0, %v135_v42, 0.0 }
  0xac   :  { %v359_v50 = vpop.eup %358  ;;  %215 = vst.msk [vmem:[%s657_s1 + $0x10] sm:$0xf] %vm210_vm2, %v328_v43  ;;  %v136_v9 = vmul.f32 %v357_v47, %v466_v16  ;;  %v111_v52 = vmax.f32 %v91_v46, 1e-16 }
  0xad   :  { %v236_v53 = vadd.f32 %v235_v44, %v234_v48  ;;  %216 = vst.msk [vmem:[%s657_s1 + $0x14] sm:$0xf] %vm210_vm2, %v329_v49  ;;  %v137_v54 = vmul.f32 %v359_v50, %v471_v17  ;;  %368 = vrsqrt.f32 %v110_v8  ;;  %v227_v49 = vld [vmem:[#allocation2] sm:$0x1] }
  0xae   :  { %v330_v55 = vpack.c.bf16 %v136_v9, %v136_v9  ;;  %v239_v56 = vsel %vm49_vm0, %v136_v9, 0.0  ;;  %370 = vrsqrt.f32 %v111_v52  ;;  %v94_v57 = vpop.xlane.xlu0 %93  ;;  %v97_v58 = vpop.xlane.xlu1 %96 }
  0xaf   :  { %v361_v59 = vpop.eup %360  ;;  %v238_v60 = vadd.f32 %v237_v51, %v236_v53  ;;  %v331_v61 = vpack.c.bf16 %v137_v54, %v137_v54  ;;  %v112_v16 = vmax.f32 %v94_v57, 1e-16  ;;  %v241_v63 = vsel %vm49_vm0, %v137_v54, 0.0 }
  0xb0   :  { %v363_v62 = vpop.eup %362  ;;  %217 = vst.msk [vmem:[%s657_s1 + $0x18] sm:$0xf] %vm210_vm2, %v330_v55  ;;  %v138_v17 = vmul.f32 %v361_v59, %v482_v22  ;;  %v113_v3 = vmax.f32 %v97_v58, 1e-16 }
  0xb1   :  { %v240_v4 = vadd.f32 %v239_v56, %v238_v60  ;;  %218 = vst.msk [vmem:[%s657_s1 + $0x1c] sm:$0xf] %vm210_vm2, %v331_v61  ;;  %v139_v5 = vmul.f32 %v363_v62, %v487_v23  ;;  %372 = vrsqrt.f32 %v112_v16 }
  0xb2   :  { %v332_v7 = vpack.c.bf16 %v138_v17, %v138_v17  ;;  %v243_v10 = vsel %vm49_vm0, %v138_v17, 0.0  ;;  %374 = vrsqrt.f32 %v113_v3 }
  0xb3   :  { %v365_v11 = vpop.eup %364  ;;  %v242_v12 = vadd.f32 %v241_v63, %v240_v4  ;;  %v333_v13 = vpack.c.bf16 %v139_v5, %v139_v5  ;;  %v245_v22 = vsel %vm49_vm0, %v139_v5, 0.0 }
  0xb4   :  { %v367_v14 = vpop.eup %366  ;;  %219 = vst.msk [vmem:[%s657_s1 + $0x20] sm:$0xf] %vm210_vm2, %v332_v7  ;;  %v140_v15 = vmul.f32 %v365_v11, %v498_v28 }
  0xb5   :  { %v244_v18 = vadd.f32 %v243_v10, %v242_v12  ;;  %220 = vst.msk [vmem:[%s657_s1 + $0x24] sm:$0xf] %vm210_vm2, %v333_v13  ;;  %v141_v23 = vmul.f32 %v367_v14, %v503_v29 }
  0xb6   :  { %v334_v19 = vpack.c.bf16 %v140_v15, %v140_v15  ;;  %v247_v20 = vsel %vm49_vm0, %v140_v15, 0.0 }
  0xb7   :  { %v369_v0 = vpop.eup %368  ;;  %v246_v1 = vadd.f32 %v245_v22, %v244_v18  ;;  %v335_v21 = vpack.c.bf16 %v141_v23, %v141_v23  ;;  %v249_v28 = vsel %vm49_vm0, %v141_v23, 0.0 }
  0xb8   :  { %v371_v24 = vpop.eup %370  ;;  %221 = vst.msk [vmem:[%s657_s1 + $0x28] sm:$0xf] %vm210_vm2, %v334_v19  ;;  %v142_v25 = vmul.f32 %v369_v0, %v514_v34 }
  0xb9   :  { %v248_v26 = vadd.f32 %v247_v20, %v246_v1  ;;  %222 = vst.msk [vmem:[%s657_s1 + $0x2c] sm:$0xf] %vm210_vm2, %v335_v21  ;;  %v143_v29 = vmul.f32 %v371_v24, %v519_v35 }
  0xba   :  { %v336_v27 = vpack.c.bf16 %v142_v25, %v142_v25  ;;  %v251_v30 = vsel %vm49_vm0, %v142_v25, 0.0 }
  0xbb   :  { %v373_v31 = vpop.eup %372  ;;  %v250_v32 = vadd.f32 %v249_v28, %v248_v26  ;;  %v337_v2 = vpack.c.bf16 %v143_v29, %v143_v29  ;;  %v253_v34 = vsel %vm49_vm0, %v143_v29, 0.0 }
  0xbc   :  { %v375_v33 = vpop.eup %374  ;;  %223 = vst.msk [vmem:[%s657_s1 + $0x30] sm:$0xf] %vm210_vm2, %v336_v27  ;;  %v144_v36 = vmul.f32 %v373_v31, %v530_v40 }
  0xbd   :  { %v252_v6 = vadd.f32 %v251_v30, %v250_v32  ;;  %224 = vst.msk [vmem:[%s657_s1 + $0x34] sm:$0xf] %vm210_vm2, %v337_v2  ;;  %v145_v35 = vmul.f32 %v375_v33, %v535_v41 }
  0xbe   :  { %v338_v37 = vpack.c.bf16 %v144_v36, %v144_v36  ;;  %v255_v38 = vsel %vm49_vm0, %v144_v36, 0.0 }
  0xbf   :  { %v254_v39 = vadd.f32 %v253_v34, %v252_v6  ;;  %v339_v42 = vpack.c.bf16 %v145_v35, %v145_v35  ;;  %v257_v40 = vsel %vm49_vm0, %v145_v35, 0.0 }
  0xc0   :  { %225 = vst.msk [vmem:[%s657_s1 + $0x38] sm:$0xf] %vm210_vm2, %v338_v37 }
  0xc1   :  { %v256_v43 = vadd.f32 %v255_v38, %v254_v39  ;;  %226 = vst.msk [vmem:[%s657_s1 + $0x3c] sm:$0xf] %vm210_vm2, %v339_v42 }
  0xc3   :  { %v258_v44 = vadd.f32 %v257_v40, %v256_v43 }
  0xc5   :  { %v259_v41 = vrot.slane %v258_v44, 4 }
  0xc7   :  { %v260_v45 = vadd.f32 %v259_v41, %v258_v44 }
  0xc9   :  { %v261_v46 = vrot.slane %v260_v45, 2 }
  0xcb   :  { %v262_v47 = vadd.f32 %v261_v46, %v260_v45 }
  0xcd   :  { %v263_v48 = vrot.slane %v262_v47, 1 }
  0xcf   :  { %v264_v8 = vadd.f32 %v263_v48, %v262_v47 }
  0xd1   :  { %v265_v50 = vadd.f32 %v264_v8, %v227_v49 }
  0xd3   :  { %267 = vst.msk [vmem:[#allocation2] sm:$0x1] %vm15_vm1, %v265_v50 }
  0xda   :  { %v271_v51 = vld [vmem:[#allocation2] sm:$0x1] }
  0xdb   :  { %v272_v9 = vmul.f32 %v271_v51, %v271_v51 }
  0xdd   :  { %v273_v52 = vsel %vm15_vm1, %v272_v9, 0.0 }
  0xde   :  { %274 = vadd.xlane.f32.xlu0 %v273_v52 }
 0x16b   :  { %v275_v53 = vpop.xlane.xlu0 %274 }
 0x16c   :  { %v276_v54 = vrot.slane %v275_v53, 4 }
 0x16e   :  { %v277_v55 = vadd.f32 %v276_v54, %v275_v53 }
 0x170   :  { %v278_v56 = vrot.slane %v277_v55, 2 }
 0x172   :  { %v279_v57 = vadd.f32 %v278_v56, %v277_v55 }
 0x174   :  { %v280_v58 = vrot.slane %v279_v57, 1 }
 0x176   :  { %v281_v59 = vadd.f32 %v280_v58, %v279_v57 }
 0x178   :  { %340 = vpush %v281_v59 }
 0x1a9   :  { %s341_s1 = spop %340 }
 0x1aa   :  { %v283_v60 = vstv %s341_s1 }
 0x1ab   :  { %v285_v61 = vmul.f32 0.015625, %v283_v60 }
 0x1ad   :  { %v286_v16 = vmul.f32 0.4, %v285_v61 }
 0x1af   :  { %v287_v62 = vadd.f32 0.3, %v286_v16 }
 0x1b1   :  { %289 = vst.msk [vmem:[#allocation3] sm:$0x1] %vm288_vm3, %v287_v62 }
 0x1b2   :  { %387 = shalt.err (!%p384_p4)
}
 0x1b3   :  { %s388_s21 = scalar_lea.hbm %s658_s2, 16 }
 0x1b4   :  { %p389_p5 = scmp.ne.s32.totalorder %s658_s2, %s388_s21  ;;  %p392_p6 = scmp.lt.u32.totalorder %s388_s21, %s658_s2 }
 0x1b6   :  { %p394_p7 = pnand %p392_p6, %p389_p5 }
 0x1b8   :  { %397 = shalt.err (!%p394_p7)
}
 0x1b9   :  { %301 = dma.vmem_to_hbm [thread:$0]  %s299_s16, 16, %s658_s2, [#allocation4]  }
 0x1ba   :  { %398 = dma.done.wait [#allocation4], 16  }
 0x1bb   :  { %399 = vsyncadd [#allocation4], 4294967280 }
 0x1bc   :  { %307 = vsyncpa [#allocation4], 1 }

</bundles_post_ra>
